<compile_context>
chip_gen: v5e
topology: v5e:2x2
jax: 0.10.0
libtpu: 0.0.40
codegen_flags: <defaults>
</compile_context>

<pallas_src>
import functools

import jax
import jax.numpy as jnp
from jax import lax
from jax.experimental import pallas as pl
from jax.experimental.pallas import tpu as pltpu

_LANE = 128
_SUBLANE = 8
_MAX_TN = 512          # row-tile cap (multiple of 8)


def _round_up(x, m):
    return (x + m - 1) // m * m


def _cdiv(a, b):
    return -(-a // b)


def _vmem_budget():
    """(input-byte budget, vmem_limit_bytes, feature-tile cap) per generation.

    v5e/v6e have 128 MiB physical VMEM -> bigger tiles / fewer grid steps.
    v7x has 64 MiB -> stay conservative there (also the unknown-HW default).
    """
    cap = 64 * 1024 * 1024
    try:
        cap = getattr(pltpu.get_tpu_info(), "vmem_capacity_bytes", cap) or cap
    except Exception:
        pass
    if cap >= 96 * 1024 * 1024:                          # v5e / v6e
        return 48 * 1024 * 1024, 64 * 1024 * 1024, 4096
    return 24 * 1024 * 1024, 32 * 1024 * 1024, 2048      # v7x / unknown


def _choose_fold(n, d):
    """Fold features into rows for tiny batches (returns a divisor of d).

    Priorities: rows fill the 8 sublanes, rows give >=2 row blocks (both v7x
    TensorCores get work), the lane axis stays >=128 wide.
    """
    if n >= 2 * _SUBLANE or d <= 1:
        return 1
    best = (-1, -1, 1)
    for r in range(1, 4 * _SUBLANE + 1):
        if d % r:
            continue
        rows, d_f = n * r, d // r
        score = (4 * (rows % _SUBLANE == 0)
                 + 2 * (rows >= 2 * _SUBLANE)
                 + 1 * (d_f >= _LANE))
        cand = (score, -r, r)       # prefer the smallest fold at equal score
        if cand > best:
            best = cand
    return best[2]


def _choose_td(d128, td_cap):
    """Feature tile: multiple of 128, <= td_cap.  Prefer a divisor of d128 (no
    over-covered chunks in the last block) but never shrink the tile a lot
    for it — small tiles cost per-grid-step overhead on a DMA-bound kernel."""
    cap = min(td_cap, d128)
    q = d128 // _LANE
    best = _LANE
    for m in range(cap // _LANE, 0, -1):
        if q % m == 0:
            best = m * _LANE
            break
    if best >= max(cap // 2, min(cap, 512)):
        return best
    return cap


def _dice_sums_kernel(pred_ref, targ_ref, inter_ref, union_ref, *,
                      n_chunks, n_fblocks, td, d_f, loss_type):
    """Accumulate lane-dense per-row partial sums over the feature axis.

    grid = (row blocks [parallel], feature blocks [arbitrary]).
    inter_ref / union_ref are (tn, 128) f32 output blocks that stay resident
    across the feature (reduction) axis.
    """
    k = pl.program_id(1)

    @pl.when(k == 0)
    def _():
        inter_ref[...] = jnp.zeros_like(inter_ref)
        union_ref[...] = jnp.zeros_like(union_ref)

    # Columns past d_f exist only in the last feature block (cdiv grid, no
    # wrapper padding): they hold stale VMEM garbage and must be selected out.
    last_start = (n_fblocks - 1) * td
    not_last = (k != n_fblocks - 1) if n_fblocks > 1 else False

    def load_chunk(j):
        ps = pred_ref[:, j * _LANE:(j + 1) * _LANE].astype(jnp.float32)
        ts = targ_ref[:, j * _LANE:(j + 1) * _LANE].astype(jnp.float32)
        start = last_start + j * _LANE     # column start when in the last block
        if start + _LANE <= d_f:           # statically always valid -> no mask
            return ps, ts
        if start >= d_f:                   # fully past the tail iff last block
            valid = not_last
        else:                              # straddles the tail boundary
            lane = lax.broadcasted_iota(jnp.int32, ps.shape, dimension=1)
            valid = jnp.logical_or(not_last, lane < (d_f - start))
        zero = jnp.zeros_like(ps)
        return jnp.where(valid, ps, zero), jnp.where(valid, ts, zero)

    def partial_sums(ps, ts):
        if loss_type == "sqrt":
            return ps * ts, ps * ps + ts * ts
        return ps * ts, ps + ts            # 'norm' (its 2x lives in the epilogue)

    # Combine 128-lane chunk pairs locally before each accumulator RMW
    # (halves accumulator vld/vst pressure; matters on v7x).
    for j in range(0, n_chunks, 2):
        acc_i, acc_u = partial_sums(*load_chunk(j))
        if j + 1 < n_chunks:
            b_i, b_u = partial_sums(*load_chunk(j + 1))
            acc_i, acc_u = acc_i + b_i, acc_u + b_u
        inter_ref[...] += acc_i
        union_ref[...] += acc_u


def dice_loss(pred, target, *, loss_weight=1.0, reduction="none",
              loss_type="sqrt", eps=1e-05, avg_factor=1.0, max_td=None):
    assert reduction in (None, "none", "mean", "sum")
    assert loss_type in ("norm", "sqrt")
    assert pred.shape[0] == target.shape[0], f"expect {pred.shape} == {target.shape}"

    n = pred.shape[0]
    if n == 0:
        # Matches the module exactly: it early-returns `pred.sum() * 0.0`
        # (a scalar) regardless of `reduction`.
        return jnp.sum(pred) * 0.0

    # Glue: flatten (matches pred.view(num_pred, -1)).  Inputs keep their
    # incoming dtype (bf16 halves HBM traffic); the kernel upcasts per chunk.
    pred2 = pred.reshape(n, -1)
    targ2 = target.reshape(n, -1)
    d = pred2.shape[1]

    if d == 0:
        inter = jnp.zeros((n,), jnp.float32)
        union = jnp.zeros((n,), jnp.float32)
    else:
        input_budget, vmem_limit, td_cap = _vmem_budget()
        if max_td is not None:
            td_cap = max(_LANE, _round_up(max_td, _LANE))

        # Tiny batches: fold features into rows (contiguous reshape -> free).
        fold = _choose_fold(n, d)
        rows, d_f = n * fold, d // fold
        if fold > 1:
            pred2 = pred2.reshape(rows, d_f)
            targ2 = targ2.reshape(rows, d_f)

        # Feature tiling: no padding; cdiv grid over 128-lane-aligned tiles,
        # in-kernel mask for the tail of the last block.
        d128 = _round_up(d_f, _LANE)
        td = _choose_td(d128, td_cap)
        n_fblocks = _cdiv(d128, td)

        # Row tiling: multiple of 8, bounded by the double-buffered-input VMEM
        # budget (actual itemsizes) and, when possible, capped so the
        # "parallel" row axis has >=2 blocks (v7x has two TensorCores).
        rows8 = _round_up(rows, _SUBLANE)
        bytes_per_row = 2 * td * (pred2.dtype.itemsize + targ2.dtype.itemsize)
        tn_cap = max(_SUBLANE,
                     input_budget // bytes_per_row // _SUBLANE * _SUBLANE)
        tn = min(_MAX_TN, tn_cap, rows8)
        if rows8 >= 2 * _SUBLANE:
            tn = min(tn, _round_up(_cdiv(rows8, 2), _SUBLANE))
        n_rowblocks = _cdiv(rows8, tn)

        kernel = functools.partial(
            _dice_sums_kernel, n_chunks=td // _LANE, n_fblocks=n_fblocks,
            td=td, d_f=d_f, loss_type=loss_type)

        out_rows = n_rowblocks * tn    # edge rows are garbage, sliced off below
        # NOTE: default double-buffering; on v5e, pipeline_mode=pl.Buffered(3)
        # on the input specs is an option if profiling shows exposed DMA gaps.
        inter_l, union_l = pl.pallas_call(
            kernel,
            out_shape=(jax.ShapeDtypeStruct((out_rows, _LANE), jnp.float32),
                       jax.ShapeDtypeStruct((out_rows, _LANE), jnp.float32)),
            grid_spec=pltpu.PrefetchScalarGridSpec(
                num_scalar_prefetch=0,
                grid=(n_rowblocks, n_fblocks),
                in_specs=[
                    pl.BlockSpec((tn, td), lambda i, k: (i, k)),
                    pl.BlockSpec((tn, td), lambda i, k: (i, k)),
                ],
                out_specs=[
                    pl.BlockSpec((tn, _LANE), lambda i, k: (i, 0)),
                    pl.BlockSpec((tn, _LANE), lambda i, k: (i, 0)),
                ],
            ),
            compiler_params=pltpu.CompilerParams(
                dimension_semantics=("parallel", "arbitrary"),
                vmem_limit_bytes=vmem_limit,
            ),
        )(pred2, targ2)

        # Tiny epilogue: 128->1 lane reduce, drop garbage rows, un-fold.
        inter = jnp.sum(inter_l[:rows], axis=1)
        union = jnp.sum(union_l[:rows], axis=1)
        if fold > 1:
            inter = inter.reshape(n, fold).sum(axis=1)
            union = union.reshape(n, fold).sum(axis=1)

    # Same closed form for both loss types ('norm''s 2x on the intersection
    # was hoisted out of the kernel): loss = 1 - 2*inter/(union + eps).
    loss = 1.0 - 2.0 * inter / (union + eps)

    if reduction == "sum":
        loss = jnp.sum(loss)
    elif reduction == "mean":
        loss = jnp.mean(loss)

    return loss_weight * loss / avg_factor


def _dice_loss_ref(pred, target, *, loss_weight=1.0, reduction="none",
                   loss_type="sqrt", eps=1e-05, avg_factor=1.0):
    n = pred.shape[0]
    p = pred.reshape(n, -1).astype(jnp.float32)
    t = target.reshape(n, -1).astype(jnp.float32)
    if loss_type == "sqrt":
        inter = jnp.sum(p * t, axis=1)
        union = jnp.sum(p * p, axis=1) + jnp.sum(t * t, axis=1) + eps
        loss = 1.0 - 2.0 * inter / union
    else:
        inter = 2.0 * jnp.sum(p * t, axis=1)
        union = jnp.sum(p, axis=1) + jnp.sum(t, axis=1) + eps
        loss = 1.0 - inter / union
    if reduction == "sum":
        loss = jnp.sum(loss)
    elif reduction == "mean":
        loss = jnp.mean(loss)
    return loss_weight * loss / avg_factor


if __name__ == "__main__":
    key = jax.random.PRNGKey(0)
    k1, k2, k3, k4 = jax.random.split(key, 4)

    # Small shapes consistent with the module's usage (segmentation-style maps).
    N, C, H, W = 2, 4, 16, 16
    pred = jax.nn.sigmoid(jax.random.normal(k1, (N, C, H, W), dtype=jnp.float32))
    target = (jax.random.uniform(k2, (N, C, H, W)) > 0.5).astype(jnp.float32)

    # Default config: loss_type='sqrt', reduction='none'.
    out = jax.block_until_ready(dice_loss(pred, target))
    ref = _dice_loss_ref(pred, target)
    assert out.shape == (N,), out.shape
    assert jnp.allclose(out, ref, atol=1e-5, rtol=1e-5), (out, ref)

    # 'norm' branch + 'mean' reduction.
    out_n = jax.block_until_ready(
        dice_loss(pred, target, reduction="mean", loss_type="norm"))
    ref_n = _dice_loss_ref(pred, target, reduction="mean", loss_type="norm")
    assert jnp.allclose(out_n, ref_n, atol=1e-5, rtol=1e-5), (out_n, ref_n)

    # bf16 inputs stream at half the HBM bytes; the kernel upcasts per chunk.
    pred_bf = pred.astype(jnp.bfloat16)
    targ_bf = target.astype(jnp.bfloat16)
    out_bf = jax.block_until_ready(dice_loss(pred_bf, targ_bf, avg_factor=2.0))
    ref_bf = _dice_loss_ref(pred_bf, targ_bf, avg_factor=2.0)
    assert jnp.allclose(out_bf, ref_bf, atol=1e-5, rtol=1e-5), (out_bf, ref_bf)

    # Awkward feature size + forced small feature tile: exercises the cdiv
    # feature grid, the in-kernel lane-tail mask, the over-covered-chunk mask
    # and partially out-of-bounds row blocks.
    p2 = jax.nn.sigmoid(jax.random.normal(k3, (16, 24, 25), dtype=jnp.float32))
    t2 = (jax.random.uniform(k4, (16, 24, 25)) > 0.5).astype(jnp.float32)
    out2 = jax.block_until_ready(dice_loss(p2, t2, reduction="sum", max_td=256))
    ref2 = _dice_loss_ref(p2, t2, reduction="sum")
    assert jnp.allclose(out2, ref2, atol=1e-4, rtol=1e-5), (out2, ref2)

    print("KERNEL_OK")
</pallas_src>

<mosaic_0001>
module attributes {stable_mosaic.version = 11 : i64} {
  func.func @_dice_sums_kernel(%arg0: i32, %arg1: i32, %arg2: memref<8x128xf32, #tpu.memory_space<vmem>>, %arg3: memref<8x128xf32, #tpu.memory_space<vmem>>, %arg4: memref<8x128xf32, #tpu.memory_space<vmem>>, %arg5: memref<8x128xf32, #tpu.memory_space<vmem>>) attributes {dimension_semantics = [#tpu.dimension_semantics<parallel>, #tpu.dimension_semantics<arbitrary>], iteration_bounds = array<i64: 2, 1>, scalar_prefetch = 0 : i64, scratch_operands = 0 : i64, tpu.core_type = #tpu.core_type<tc>, window_params = [{transform_indices = @transform_0, window_bounds = array<i64: 8, 128>}, {transform_indices = @transform_1, window_bounds = array<i64: 8, 128>}, {transform_indices = @transform_2, window_bounds = array<i64: 8, 128>}, {transform_indices = @transform_3, window_bounds = array<i64: 8, 128>}]} {
    %c0_i32 = arith.constant 0 : i32
    %0 = arith.cmpi eq, %arg1, %c0_i32 : i32
    %1 = arith.extui %0 : i1 to i32
    %c0_i32_0 = arith.constant 0 : i32
    %2 = arith.cmpi ne, %1, %c0_i32_0 : i32
    scf.if %2 {
      %cst = arith.constant 0.000000e+00 : f32
      %15 = vector.broadcast %cst : f32 to vector<8x128xf32>
      %c0_12 = arith.constant 0 : index
      %c0_13 = arith.constant 0 : index
      %16 = vector.load %arg4[%c0_12, %c0_13] : memref<8x128xf32, #tpu.memory_space<vmem>>, vector<8x128xf32>
      tpu.vector_store %arg4[%c0_12, %c0_13], %15 {strides = array<i32>} : memref<8x128xf32, #tpu.memory_space<vmem>>, vector<8x128xf32>,
      %cst_14 = arith.constant 0.000000e+00 : f32
      %17 = vector.broadcast %cst_14 : f32 to vector<8x128xf32>
      %c0_15 = arith.constant 0 : index
      %c0_16 = arith.constant 0 : index
      %18 = vector.load %arg5[%c0_15, %c0_16] : memref<8x128xf32, #tpu.memory_space<vmem>>, vector<8x128xf32>
      tpu.vector_store %arg5[%c0_15, %c0_16], %17 {strides = array<i32>} : memref<8x128xf32, #tpu.memory_space<vmem>>, vector<8x128xf32>,
    } else {
    }
    %c0 = arith.constant 0 : index
    %c0_1 = arith.constant 0 : index
    %3 = vector.load %arg2[%c0, %c0_1] : memref<8x128xf32, #tpu.memory_space<vmem>>, vector<8x128xf32>
    %c0_2 = arith.constant 0 : index
    %c0_3 = arith.constant 0 : index
    %4 = vector.load %arg3[%c0_2, %c0_3] : memref<8x128xf32, #tpu.memory_space<vmem>>, vector<8x128xf32>
    %5 = arith.mulf %3, %4 : vector<8x128xf32>
    %6 = arith.mulf %3, %3 : vector<8x128xf32>
    %7 = arith.mulf %4, %4 : vector<8x128xf32>
    %8 = arith.addf %6, %7 : vector<8x128xf32>
    %c0_4 = arith.constant 0 : index
    %c0_5 = arith.constant 0 : index
    %9 = vector.load %arg4[%c0_4, %c0_5] : memref<8x128xf32, #tpu.memory_space<vmem>>, vector<8x128xf32>
    %10 = arith.addf %9, %5 : vector<8x128xf32>
    %c0_6 = arith.constant 0 : index
    %c0_7 = arith.constant 0 : index
    %11 = vector.load %arg4[%c0_6, %c0_7] : memref<8x128xf32, #tpu.memory_space<vmem>>, vector<8x128xf32>
    tpu.vector_store %arg4[%c0_6, %c0_7], %10 {strides = array<i32>} : memref<8x128xf32, #tpu.memory_space<vmem>>, vector<8x128xf32>,
    %c0_8 = arith.constant 0 : index
    %c0_9 = arith.constant 0 : index
    %12 = vector.load %arg5[%c0_8, %c0_9] : memref<8x128xf32, #tpu.memory_space<vmem>>, vector<8x128xf32>
    %13 = arith.addf %12, %8 : vector<8x128xf32>
    %c0_10 = arith.constant 0 : index
    %c0_11 = arith.constant 0 : index
    %14 = vector.load %arg5[%c0_10, %c0_11] : memref<8x128xf32, #tpu.memory_space<vmem>>, vector<8x128xf32>
    tpu.vector_store %arg5[%c0_10, %c0_11], %13 {strides = array<i32>} : memref<8x128xf32, #tpu.memory_space<vmem>>, vector<8x128xf32>,
    return
  }
  func.func @transform_0(%arg0: i32, %arg1: i32) -> (i32, i32) {
    %c0_i32 = arith.constant 0 : i32
    return %arg0, %arg1 : i32, i32
  }
  func.func @transform_1(%arg0: i32, %arg1: i32) -> (i32, i32) {
    %c0_i32 = arith.constant 0 : i32
    return %arg0, %arg1 : i32, i32
  }
  func.func @transform_2(%arg0: i32, %arg1: i32) -> (i32, i32) {
    %c0_i32 = arith.constant 0 : i32
    %c0_i32_0 = arith.constant 0 : i32
    return %arg0, %c0_i32 : i32, i32
  }
  func.func @transform_3(%arg0: i32, %arg1: i32) -> (i32, i32) {
    %c0_i32 = arith.constant 0 : i32
    %c0_i32_0 = arith.constant 0 : i32
    return %arg0, %c0_i32 : i32, i32
  }
}

</mosaic_0001>

<bundles_post_ra>
// kernel: tpu_custom_call.1
= control target key start
LH: loop header
LB: loop body
LE: loop exit
PB: predicated region body
PF: predicated region fallthrough
CT: control target
= control target key end

     0   :  { %9 = vsyncpa [#allocation3], 0  ;;  %s897_s0 = inlined_call_operand.hbm [shape: f32[16,128], index: 0, kind: input, shape index: {}]   ;;  %s898_s1 = inlined_call_operand.hbm [shape: f32[16,128], index: 1, kind: input, shape index: {}]   ;;  %s899_s2 = inlined_call_operand.hbm [shape: f32[16,128], index: 2, kind: output, shape index: {0}]   ;;  %s900_s3 = inlined_call_operand.hbm [shape: f32[16,128], index: 3, kind: output, shape index: {1}]  }
   0x1   :  { %11 = vsyncpa [#allocation3 + $0x1], 0 }
   0x2   :  { %12 = vsyncpa [#allocation6], 0 }
   0x3   :  { %14 = vsyncpa [#allocation6 + $0x1], 0 }
   0x4   :  { %15 = vsyncpa [#allocation4], 0 }
   0x5   :  { %17 = vsyncpa [#allocation4 + $0x1], 0 }
   0x6   :  { %18 = vsyncpa [#allocation9], 0 }
   0x7   :  { %20 = vsyncpa [#allocation9 + $0x1], 0  ;;  %s737_s12 = smov 0   ;;  %s739_s13 = smov 0  }
   0x8   :  { %s741_s14 = smov 0   ;;  %s743_s15 = smov 0  }
   0x9   :  { %s745_s16 = smov 0   ;;  %s747_s17 = smov 0  }
   0xa LB: > { %s445_s18 = sadd.s32 4294967295, %s715_s17   ;;  %s446_s19 = sadd.s32 4294967294, %s715_s17   ;;  %s715_s17 = sphi %s747_s17, %s26_s17   ;;  %s711_s16 = sphi %s745_s16, %s909_s16   ;;  %s707_s15 = sphi %s743_s15, %s908_s15   ;;  %s703_s14 = sphi %s741_s14, %s907_s14   ;;  %s699_s13 = sphi %s739_s13, %s906_s13   ;;  %s695_s12 = sphi %s737_s12, %s905_s12  }
   0xb   : > { %s38_s20 = sadd.s32 1, %s711_s16  ;;  %s47_s21 = sadd.s32 1, %s703_s14 }
   0xc   : > { %p40_p0 = scmp.ge.s32.totalorder %s38_s20, 2  ;;  %p54_p1 = scmp.ne.s32.totalorder %s703_s14, %s699_s13 }
   0xd   : > { %p55_p2 = scmp.eq.s32.totalorder %s715_s17, 0  ;;  %p60_p3 = scmp.ne.s32.totalorder %s699_s13, %s695_s12 }
   0xe   : > { %s911_s20 = smov (%p40_p0, %s38_s20), 0  ;;  %p61_p5 = scmp.eq.s32.totalorder %s445_s18, 0 }
   0xf   : > { %p778_p4 = por %p55_p2, %p54_p1  ;;  %s42_s23 = ssub.s32 %s711_s16, %s911_s20 }
  0x10   : > { %p112_p6 = scmp.eq.s32.totalorder %s445_s18, 1  ;;  %p45_p7 = scmp.eq.s32.totalorder %s42_s23, 0 }
  0x11   : > { %p784_p8 = por %p61_p5, %p60_p3  ;;  %p118_p10 = scmp.eq.s32.totalorder %s446_s19, 1 }
  0x12   : > { %p788_p9 = por %p112_p6, %p54_p1  ;;  %p448_p12 = scmp.ge.s32.totalorder %s715_s17, 2 }
  0x13   : > { %s793_s26 = scalar_select %p45_p7, %s703_s14, %s47_s21  }
  0x14   : > { %p795_p11 = por %p118_p10, %p60_p3  ;;  %p486_p13 = scmp.lt.s32.totalorder %s715_s17, 2 }
  0x15   : > { %s164_s28 = sand.u32 1, %s703_s14   ;;  %s450_s30 = sshll.u32 %s711_s16, 3 }
  0x16   : > { %s449_s29 = sshll.u32 %s164_s28, 3  ;;  %s173_s6 = scalar_lea.hbm %s897_s0, %s450_s30 }
  0x17   : > { %s168_s7 = scalar_lea.vmem [#allocation2], %s449_s29  ;;  %s175_s9 = sshll.u32 %s173_s6, 4  ;;  %s176_s9 = int_to_ptr.hbm [resolvable:$true] %s175_s9 }
  0x18   : > { %s177_s8 = sshll.u32 %s168_s7, 4  ;;  %p473_p0 = pnand %p486_p13, %p778_p4  ;;  %s178_s8 = int_to_ptr.vmem [resolvable:$true] %s177_s8 }
  0x19   : > { %p453_p1 = scmp.ge.s32.totalorder %s715_s17, 1  ;;  %p202_p2 = scmp.lt.s32.totalorder %s715_s17, 3 }
  0x1a   : > { %s165_s10 = scalar_lea.sflag [#allocation3], %s164_s28  ;;  %s193_s19 = scalar_lea.hbm %s898_s1, %s450_s30 }
  0x1b   : > { %475 = dma.hbm_to_vmem [thread:$0]  (!%p473_p0), %s176_s9, 128, %s178_s8, %s165_s10  }
  0x1c   : > { %p203_p3 = pnand %p453_p1, %p202_p2  ;;  %s188_s21 = scalar_lea.vmem [#allocation5], %s449_s29 }
  0x1d   : > { %s197_s23 = sshll.u32 %s188_s21, 4  ;;  %s195_s4 = sshll.u32 %s193_s19, 4  ;;  %s198_s23 = int_to_ptr.vmem [resolvable:$true] %s197_s23  ;;  %s196_s4 = int_to_ptr.hbm [resolvable:$true] %s195_s4 }
  0x1e   : > { %s185_s5 = scalar_lea.sflag [#allocation6], %s164_s28  ;;  %206 = sbr.rel (%p203_p3) target bundleno = 67 (0x43), region = 28 }
  0x1f   : > { %478 = dma.hbm_to_vmem [thread:$0]  (!%p473_p0), %s196_s4, 128, %s198_s23, %s185_s5  }
  0x20   : > { %s814_s22 = sand.u32 (!%p203_p3), 1, %s699_s13  }
  0x21   : > { %s817_s6 = sshll.u32 (!%p203_p3), %s814_s22, 3  ;;  %s209_s7 = scalar_lea.sflag (!%p203_p3), [#allocation3], %s814_s22 }
  0x22   : > { %s212_s8 = scalar_lea.vmem (!%p203_p3), [#allocation2], %s817_s6 }
  0x23   : > { %678 = dma.done.wait (%p784_p8), %s209_s7, 128  }
  0x24   : > { %680 = vsyncadd (%p784_p8), %s209_s7, 4294967168  ;;  %s219_s28 = scalar_lea.sflag [#allocation6], %s814_s22  ;;  %s222_s29 = scalar_lea.vmem [#allocation5], %s817_s6 }
  0x25   : > { %682 = dma.done.wait (%p784_p8), %s219_s28, 128  }
  0x26   : > { %684 = vsyncadd (%p784_p8), %s219_s28, 4294967168  ;;  %s460_s30 = sshll.u32 %s707_s15, 3  ;;  %v262_v0 = vld [vmem:[%s212_s8] sm:$0xff]  ;;  %v263_v1 = vld [vmem:[%s222_s29] sm:$0xff]  ;;  %s248_s23 = scalar_lea.vmem [#allocation7], %s817_s6 }
  0x27   : > { %s290_s11 = scalar_lea.hbm %s899_s2, %s460_s30  ;;  %s304_s21 = scalar_lea.hbm %s900_s3, %s460_s30  ;;  %v264_v2 = vmul.f32 %v263_v1, %v262_v0  ;;  %v265_v3 = vmul.f32 %v262_v0, %v262_v0  ;;  %v266_v4 = vmul.f32 %v263_v1, %v263_v1 }
  0x28   : > { %s839_s4 = sshll.u32 %s248_s23, 4  ;;  %s294_s24 = sshll.u32 %s290_s11, 4  ;;  %s293_s4 = int_to_ptr.vmem [resolvable:$true] %s839_s4  ;;  %s295_s24 = int_to_ptr.hbm [resolvable:$true] %s294_s24 }
  0x29   : > { %s255_s15 = scalar_lea.vmem [#allocation8], %s817_s6  ;;  %s308_s7 = sshll.u32 %s304_s21, 4  ;;  %v267_v5 = vadd.f32 %v266_v4, %v265_v3  ;;  %270 = vst [vmem:[%s248_s23] sm:$0xff] %v264_v2  ;;  %s846_s7 = int_to_ptr.hbm [resolvable:$true] %s308_s7 }
  0x2a   : > { %s842_s5 = sshll.u32 %s255_s15, 4  ;;  %s275_s8 = scalar_lea.sflag [#allocation4], %s814_s22  ;;  %s307_s5 = int_to_ptr.vmem [resolvable:$true] %s842_s5 }
  0x2b   : > { %s611_s28 = sshra.s32 %s295_s24, 4  ;;  %s617_s9 = scalar_lea.hbm %s899_s2, 16  ;;  %s612_s28 = int_to_ptr.hbm [resolvable:$true] %s611_s28 }
  0x2c   : > { %s613_s29 = scalar_lea.hbm %s612_s28, 8  ;;  %p618_p7 = scmp.lt.s32.totalorder %s612_s28, %s899_s2 }
  0x2d   : > { %p614_p4 = scmp.ne.s32.totalorder %s612_s28, %s613_s29  ;;  %p619_p8 = scmp.lt.s32.totalorder %s617_s9, %s613_s29 }
  0x2f   : > { %p615_p5 = pnand %p614_p4, %p788_p9  ;;  %p620_p10 = por %p619_p8, %p618_p7 }
  0x31   : > { %p616_p6 = pneg %p615_p5 }
  0x33   : > { %p621_p13 = pnand %p620_p10, %p616_p6 }
  0x35   : > { %624 = shalt.err (!%p621_p13)
}
  0x36   : > { %468 = dma.vmem_to_hbm [thread:$0]  (%p788_p9), %s293_s4, 128, %s295_s24, %s275_s8   ;;  %273 = vst [vmem:[%s255_s15] sm:$0xff] %v267_v5 }
  0x37   : > { %s280_s18 = scalar_lea.sflag [#allocation9], %s814_s22  ;;  %s639_s19 = sshra.s32 %s846_s7, 4  ;;  %s640_s19 = int_to_ptr.hbm [resolvable:$true] %s639_s19 }
  0x38   : > { %s641_s21 = scalar_lea.hbm %s640_s19, 8  ;;  %s645_s29 = scalar_lea.hbm %s900_s3, 16 }
  0x39   : > { %p642_p0 = scmp.ne.s32.totalorder %s640_s19, %s641_s21  ;;  %p646_p3 = scmp.lt.s32.totalorder %s640_s19, %s900_s3 }
  0x3a   : > { %p647_p4 = scmp.lt.s32.totalorder %s645_s29, %s641_s21 }
  0x3b   : > { %p643_p1 = pnand %p642_p0, %p788_p9 }
  0x3c   : > { %p648_p5 = por %p647_p4, %p646_p3 }
  0x3d   : > { %p644_p2 = pneg %p643_p1 }
  0x3f   : > { %p649_p6 = pnand %p648_p5, %p644_p2 }
  0x41   : > { %652 = shalt.err (!%p649_p6)
}
  0x42   : > { %469 = dma.vmem_to_hbm [thread:$0]  (%p788_p9), %s307_s5, 128, %s846_s7, %s280_s18  }
  0x43 PF: > { %s320_s22 = sand.u32 1, %s695_s12   ;;  %p480_p7 = pnand %p448_p12, %p795_p11 }
  0x44   : > { %s321_s4 = scalar_lea.sflag [#allocation4], %s320_s22 }
  0x45   : > { %p481_p8 = pneg %p480_p7 }
  0x47   : > { %686 = dma.done.wait (%p481_p8), %s321_s4, 128  }
  0x48   : > { %688 = vsyncadd (%p481_p8), %s321_s4, 4294967168  ;;  %s331_s24 = scalar_lea.sflag [#allocation9], %s320_s22 }
  0x49   : > { %690 = dma.done.wait (%p481_p8), %s331_s24, 128  }
  0x4a   : > { %692 = vsyncadd (%p481_p8), %s331_s24, 4294967168  ;;  %s26_s17 = sadd.s32 1, %s715_s17   ;;  %s905_s12 = smov %s699_s13 }
  0x4b   : > { %p23_p10 = scmp.ge.s32.totalorder %s26_s17, 4   ;;  %s906_s13 = smov %s703_s14 }
  0x4c   : > { %s907_s14 = smov %s793_s26  ;;  %s908_s15 = smov %s711_s16 }
  0x4d   : > { %s909_s16 = smov %s911_s20  ;;  %25 = sbr.rel (!%p23_p10) target bundleno = 10 (0xa), region = 107 }
  0x52   :  { %337 = vsyncpa [#allocation3], 1 }
  0x53   :  { %339 = vsyncpa [#allocation3 + $0x1], 1 }
  0x54   :  { %340 = vsyncpa [#allocation6], 1 }
  0x55   :  { %342 = vsyncpa [#allocation6 + $0x1], 1 }
  0x56   :  { %343 = vsyncpa [#allocation4], 1 }
  0x57   :  { %345 = vsyncpa [#allocation4 + $0x1], 1 }
  0x58   :  { %346 = vsyncpa [#allocation9], 1 }
  0x59   :  { %348 = vsyncpa [#allocation9 + $0x1], 1 }

</bundles_post_ra>
